<compile_context>
chip_gen: v5e
topology: v5e:2x2
jax: 0.10.0
libtpu: 0.0.40
codegen_flags: <defaults>
</compile_context>

<pallas_src>
import numpy as np
import jax
import jax.numpy as jnp
from jax import lax
from jax.experimental import pallas as pl
from jax.experimental.pallas import tpu as pltpu

# ---- Model hyper-parameters (consistent with the module defaults) ----------
B = 2            # batch
N_NODES = 40     # N_nodes   (divisible by pool rows for clean adaptive pool)
IN_DIM = 8       # in_dim E  (divisible by pool cols)
COND_DIM = 4     # cond_dim
P0, P1 = 20, 4   # pool_size (default (20, 4)) -> prim_pool_dim = 80
POOL_DIM = P0 * P1
MLP_H = 32       # mlp_h_dim (small for the example)
MLP_IN = COND_DIM + POOL_DIM
OUT_DIM = 3
OUT_PAD = 128    # lane-dense output slab width; wrapper slices [:, :OUT_DIM]
BN_EPS = 1e-5


# ---------------------------------------------------------------------------
# Host-side constant: adaptive-avg-pool expressed as a matmul (built ONCE).
# ---------------------------------------------------------------------------
def _adaptive_pool_matrix(in_size: int, out_size: int) -> np.ndarray:
    """[in_size, out_size] matrix whose columns average the adaptive-pool bins."""
    m = np.zeros((in_size, out_size), dtype=np.float32)
    for o in range(out_size):
        s = (o * in_size) // out_size
        e = -(-((o + 1) * in_size) // out_size)  # ceil
        m[s:e, o] = 1.0 / (e - s)
    return m


# W_pool [N*E, P0*P1]: flattened-[N,E] row -> flattened-[P0,P1] pooled vector.
# Only used in the jitted wrapper to fold into the first Linear (never enters
# the kernel), so its dense kron form is a compile-time constant off the
# kernel's serial path.
_W_POOL_NP = np.kron(_adaptive_pool_matrix(N_NODES, P0),
                     _adaptive_pool_matrix(IN_DIM, P1)).astype(np.float32)


# ---------------------------------------------------------------------------
# Pallas kernel: folded pooled-projection + MLP
#   (Linear -> BN(batch stats) -> ReLU -> Linear)
# ---------------------------------------------------------------------------
def decoder_kernel(x_ref, cond_ref, weff_ref, w1c_ref, b1_ref,
                   g_ref, be_ref, w2_ref, b2_ref, o_ref):
    f32 = jnp.float32
    bsz = x_ref.shape[0]            # static
    n_nodes = cond_ref.shape[0]     # static
    h_dim = w1c_ref.shape[1]        # static
    rows = bsz * n_nodes

    # Pooled latent projected straight to hidden (W_eff = W_pool @ W1_pool was
    # pre-folded in the wrapper) -> [B, H] in ONE matmul.
    pool_h = jnp.dot(x_ref[...], weff_ref[...], preferred_element_type=f32)

    # Conditioner projected once per node (shared across batches) + bias -> [N, H].
    cond_h = (jnp.dot(cond_ref[...], w1c_ref[...], preferred_element_type=f32)
              + b1_ref[...])

    # h[b*N + n, :] = pool_h[b, :] + cond_h[n, :]
    # Single fused broadcast-add + leading-dim collapse (N % 8 == 0 -> layout-free).
    h = (pool_h[:, None, :] + cond_h[None, :, :]).reshape(rows, h_dim)   # [B*N, H]

    # BatchNorm1d (training-mode batch stats, biased variance), two-pass,
    # computed on the VPU/XLU so no extra MXU ops sit on the critical chain.
    mean = jnp.mean(h, axis=0, keepdims=True)                            # [1, H]
    centered = h - mean
    var = jnp.mean(centered * centered, axis=0, keepdims=True)           # [1, H]
    scale = g_ref[...] * lax.rsqrt(var + BN_EPS)                         # [1, H]

    # Fused BN-affine + ReLU (single elementwise pass over the [B*N, H] tile).
    h_act = jnp.maximum(centered * scale + be_ref[...], 0.0)

    # Final Linear into a lane-dense, zero-padded output slab [B*N, 128].
    o_ref[...] = jnp.dot(h_act, w2_ref[...], preferred_element_type=f32) + b2_ref[...]


# ---------------------------------------------------------------------------
# Glue: parameter prep + pallas_call wrapper (jitted -> constants hoisted)
# ---------------------------------------------------------------------------
@jax.jit
def protein_reconstructor_forward(x, cond, params):
    """x: [B*N, E] f32, cond: [N, C] f32 -> coords [B*N, 3] f32."""
    w1, b1, gamma, beta, w2, b2 = params
    bsz = x.shape[0] // N_NODES
    rows = bsz * N_NODES

    x_flat = x.reshape(bsz, N_NODES * IN_DIM)            # [B, N*E]

    w1t = w1.T                                           # [MLP_IN, H]
    w1c = w1t[:COND_DIM]                                 # [C, H]
    w1p = w1t[COND_DIM:]                                 # [POOL_DIM, H]
    # Fold the adaptive pool into the first Linear's pooled block: [N*E, H].
    # (params + compile-time constant only, so this matmul is hoisted by XLA
    #  and sits off the kernel's serial path.)
    w_eff = jnp.asarray(_W_POOL_NP) @ w1p

    b1_2d = b1.reshape(1, MLP_H)
    gamma_2d = gamma.reshape(1, MLP_H)
    beta_2d = beta.reshape(1, MLP_H)

    # Zero-pad the final Linear to a 128-wide lane-dense output slab.
    w2_pad = jnp.zeros((MLP_H, OUT_PAD), jnp.float32).at[:, :OUT_DIM].set(w2.T)
    b2_pad = jnp.zeros((1, OUT_PAD), jnp.float32).at[:, :OUT_DIM].set(
        b2.reshape(1, OUT_DIM))

    # Advisory cost estimate so XLA can schedule/overlap this micro-call.
    flops = int(2 * bsz * (N_NODES * IN_DIM) * MLP_H        # pooled projection
                + 2 * N_NODES * COND_DIM * MLP_H            # conditioner projection
                + 2 * rows * MLP_H * OUT_PAD                # final linear
                + 10 * rows * MLP_H)                        # BN stats / affine / ReLU
    bytes_accessed = int(4 * (x_flat.size + cond.size + w_eff.size + w1c.size
                              + 3 * MLP_H + MLP_H * OUT_PAD + OUT_PAD
                              + rows * OUT_PAD))
    cost = pl.CostEstimate(flops=flops, transcendentals=MLP_H,
                           bytes_accessed=bytes_accessed)

    vmem = pl.BlockSpec(memory_space=pltpu.MemorySpace.VMEM)
    out = pl.pallas_call(
        decoder_kernel,
        out_shape=jax.ShapeDtypeStruct((rows, OUT_PAD), jnp.float32),
        in_specs=[vmem] * 9,
        out_specs=vmem,
        cost_estimate=cost,
    )(x_flat, cond, w_eff, w1c, b1_2d, gamma_2d, beta_2d, w2_pad, b2_pad)

    return out[:, :OUT_DIM]


# ---------------------------------------------------------------------------
# Pure-JAX reference mirroring the PyTorch forward (for correctness check)
# ---------------------------------------------------------------------------
def reference_forward(x, cond, params):
    w1, b1, gamma, beta, w2, b2 = params
    bsz = x.shape[0] // N_NODES
    x_r = x.reshape(bsz, N_NODES, IN_DIM)
    kh, kw = N_NODES // P0, IN_DIM // P1
    pooled = x_r.reshape(bsz, P0, kh, P1, kw).mean(axis=(2, 4)).reshape(bsz, POOL_DIM)
    pool_ex = jnp.broadcast_to(pooled[:, None, :], (bsz, N_NODES, POOL_DIM))
    cond_ex = jnp.broadcast_to(cond[None], (bsz, N_NODES, COND_DIM))
    mlp_in = jnp.concatenate([cond_ex, pool_ex], axis=-1).reshape(bsz * N_NODES, MLP_IN)
    h = mlp_in @ w1.T + b1
    mean = h.mean(axis=0)
    var = ((h - mean) ** 2).mean(axis=0)          # biased, training-mode BN
    h = (h - mean) / jnp.sqrt(var + BN_EPS) * gamma + beta
    h = jnp.maximum(h, 0.0)
    return h @ w2.T + b2


if __name__ == "__main__":
    key = jax.random.PRNGKey(0)
    kx, kc, k1, kb1, kg, kbt, k2, kb2 = jax.random.split(key, 8)

    # Deterministic synthetic parameters (shapes per the module's __init__)
    w1 = jax.random.normal(k1, (MLP_H, MLP_IN), jnp.float32) * 0.1    # Linear(MLP_IN -> H)
    b1 = jax.random.normal(kb1, (MLP_H,), jnp.float32) * 0.1
    gamma = 1.0 + jax.random.normal(kg, (MLP_H,), jnp.float32) * 0.05  # BatchNorm1d(H)
    beta = jax.random.normal(kbt, (MLP_H,), jnp.float32) * 0.05
    w2 = jax.random.normal(k2, (3, MLP_H), jnp.float32) * 0.1          # Linear(H -> 3)
    b2 = jax.random.normal(kb2, (3,), jnp.float32) * 0.1
    params = (w1, b1, gamma, beta, w2, b2)

    # Inputs: embeddings x [B*N, E], conditioner [N, Cdim]
    x = jax.random.normal(kx, (B * N_NODES, IN_DIM), jnp.float32)
    cond = jax.random.normal(kc, (N_NODES, COND_DIM), jnp.float32)

    out = protein_reconstructor_forward(x, cond, params)
    out = jax.block_until_ready(out)

    ref = reference_forward(x, cond, params)
    assert out.shape == (B * N_NODES, OUT_DIM), out.shape
    np.testing.assert_allclose(np.asarray(out), np.asarray(ref), rtol=1e-4, atol=1e-4)

    print("KERNEL_OK")
</pallas_src>

<mosaic_0001>
module attributes {stable_mosaic.version = 11 : i64} {
  func.func @decoder_kernel(%arg0: memref<2x320xf32, #tpu.memory_space<vmem>>, %arg1: memref<40x4xf32, #tpu.memory_space<vmem>>, %arg2: memref<320x32xf32, #tpu.memory_space<vmem>>, %arg3: memref<4x32xf32, #tpu.memory_space<vmem>>, %arg4: memref<1x32xf32, #tpu.memory_space<vmem>>, %arg5: memref<1x32xf32, #tpu.memory_space<vmem>>, %arg6: memref<1x32xf32, #tpu.memory_space<vmem>>, %arg7: memref<32x128xf32, #tpu.memory_space<vmem>>, %arg8: memref<1x128xf32, #tpu.memory_space<vmem>>, %arg9: memref<80x128xf32, #tpu.memory_space<vmem>>) attributes {dimension_semantics = [], scalar_prefetch = 0 : i64, scratch_operands = 0 : i64, tpu.core_type = #tpu.core_type<tc>} {
    %c0 = arith.constant 0 : index
    %c0_0 = arith.constant 0 : index
    %0 = vector.load %arg0[%c0, %c0_0] : memref<2x320xf32, #tpu.memory_space<vmem>>, vector<2x320xf32>
    %c0_1 = arith.constant 0 : index
    %c0_2 = arith.constant 0 : index
    %1 = vector.load %arg2[%c0_1, %c0_2] : memref<320x32xf32, #tpu.memory_space<vmem>>, vector<320x32xf32>
    %cst = arith.constant dense<0.000000e+00> : vector<2x32xf32>
    %2 = tpu.matmul %0, %1, %cst {dimension_numbers = #tpu.dot_dimension_numbers<[1], [0], [0], [1], [0, 0, 1, 1], [], []>} : vector<2x320xf32>, vector<320x32xf32>, vector<2x32xf32> -> vector<2x32xf32>
    %c0_3 = arith.constant 0 : index
    %c0_4 = arith.constant 0 : index
    %3 = vector.load %arg1[%c0_3, %c0_4] : memref<40x4xf32, #tpu.memory_space<vmem>>, vector<40x4xf32>
    %c0_5 = arith.constant 0 : index
    %c0_6 = arith.constant 0 : index
    %4 = vector.load %arg3[%c0_5, %c0_6] : memref<4x32xf32, #tpu.memory_space<vmem>>, vector<4x32xf32>
    %cst_7 = arith.constant dense<0.000000e+00> : vector<40x32xf32>
    %5 = tpu.matmul %3, %4, %cst_7 {dimension_numbers = #tpu.dot_dimension_numbers<[1], [0], [0], [1], [0, 0, 1, 1], [], []>} : vector<40x4xf32>, vector<4x32xf32>, vector<40x32xf32> -> vector<40x32xf32>
    %c0_8 = arith.constant 0 : index
    %c0_9 = arith.constant 0 : index
    %6 = vector.load %arg4[%c0_8, %c0_9] : memref<1x32xf32, #tpu.memory_space<vmem>>, vector<1x32xf32>
    %7 = vector.broadcast %6 : vector<1x32xf32> to vector<40x32xf32>
    %8 = arith.addf %5, %7 : vector<40x32xf32>
    %9 = vector.shape_cast %2 : vector<2x32xf32> to vector<2x1x32xf32>
    %10 = vector.shape_cast %8 : vector<40x32xf32> to vector<1x40x32xf32>
    %11 = vector.broadcast %9 : vector<2x1x32xf32> to vector<2x40x32xf32>
    %12 = vector.broadcast %10 : vector<1x40x32xf32> to vector<2x40x32xf32>
    %13 = arith.addf %11, %12 : vector<2x40x32xf32>
    %14 = vector.shape_cast %13 : vector<2x40x32xf32> to vector<80x32xf32>
    %cst_10 = arith.constant dense<0.000000e+00> : vector<32xf32>
    %15 = vector.multi_reduction <add>, %14, %cst_10 [0] : vector<80x32xf32> to vector<32xf32>
    %16 = vector.shape_cast %15 : vector<32xf32> to vector<1x32xf32>
    %cst_11 = arith.constant 8.000000e+01 : f32
    %17 = vector.broadcast %cst_11 : f32 to vector<1x32xf32>
    %18 = arith.divf %16, %17 : vector<1x32xf32>
    %19 = vector.broadcast %18 : vector<1x32xf32> to vector<80x32xf32>
    %20 = arith.subf %14, %19 : vector<80x32xf32>
    %21 = arith.mulf %20, %20 : vector<80x32xf32>
    %cst_12 = arith.constant dense<0.000000e+00> : vector<32xf32>
    %22 = vector.multi_reduction <add>, %21, %cst_12 [0] : vector<80x32xf32> to vector<32xf32>
    %23 = vector.shape_cast %22 : vector<32xf32> to vector<1x32xf32>
    %cst_13 = arith.constant 8.000000e+01 : f32
    %24 = vector.broadcast %cst_13 : f32 to vector<1x32xf32>
    %25 = arith.divf %23, %24 : vector<1x32xf32>
    %c0_14 = arith.constant 0 : index
    %c0_15 = arith.constant 0 : index
    %26 = vector.load %arg5[%c0_14, %c0_15] : memref<1x32xf32, #tpu.memory_space<vmem>>, vector<1x32xf32>
    %cst_16 = arith.constant 9.99999974E-6 : f32
    %27 = vector.broadcast %cst_16 : f32 to vector<1x32xf32>
    %28 = arith.addf %25, %27 : vector<1x32xf32>
    %29 = math.rsqrt %28 : vector<1x32xf32>
    %30 = arith.mulf %26, %29 : vector<1x32xf32>
    %31 = vector.broadcast %30 : vector<1x32xf32> to vector<80x32xf32>
    %32 = arith.mulf %20, %31 : vector<80x32xf32>
    %c0_17 = arith.constant 0 : index
    %c0_18 = arith.constant 0 : index
    %33 = vector.load %arg6[%c0_17, %c0_18] : memref<1x32xf32, #tpu.memory_space<vmem>>, vector<1x32xf32>
    %34 = vector.broadcast %33 : vector<1x32xf32> to vector<80x32xf32>
    %35 = arith.addf %32, %34 : vector<80x32xf32>
    %cst_19 = arith.constant 0.000000e+00 : f32
    %36 = vector.broadcast %cst_19 : f32 to vector<80x32xf32>
    %37 = arith.maximumf %35, %36 : vector<80x32xf32>
    %c0_20 = arith.constant 0 : index
    %c0_21 = arith.constant 0 : index
    %38 = vector.load %arg7[%c0_20, %c0_21] : memref<32x128xf32, #tpu.memory_space<vmem>>, vector<32x128xf32>
    %cst_22 = arith.constant dense<0.000000e+00> : vector<80x128xf32>
    %39 = tpu.matmul %37, %38, %cst_22 {dimension_numbers = #tpu.dot_dimension_numbers<[1], [0], [0], [1], [0, 0, 1, 1], [], []>} : vector<80x32xf32>, vector<32x128xf32>, vector<80x128xf32> -> vector<80x128xf32>
    %c0_23 = arith.constant 0 : index
    %c0_24 = arith.constant 0 : index
    %40 = vector.load %arg8[%c0_23, %c0_24] : memref<1x128xf32, #tpu.memory_space<vmem>>, vector<1x128xf32>
    %41 = vector.broadcast %40 : vector<1x128xf32> to vector<80x128xf32>
    %42 = arith.addf %39, %41 : vector<80x128xf32>
    %c0_25 = arith.constant 0 : index
    %c0_26 = arith.constant 0 : index
    %43 = vector.load %arg9[%c0_25, %c0_26] : memref<80x128xf32, #tpu.memory_space<vmem>>, vector<80x128xf32>
    tpu.vector_store %arg9[%c0_25, %c0_26], %42 {strides = array<i32>} : memref<80x128xf32, #tpu.memory_space<vmem>>, vector<80x128xf32>,
    return
  }
}

</mosaic_0001>

<bundles_post_ra>
// kernel: protein_reconstructor_forward.1
= control target key start
LH: loop header
LB: loop body
LE: loop exit
PB: predicated region body
PF: predicated region fallthrough
CT: control target
= control target key end

     0   :  { %vm169_vm0 = vcmask 1043456   ;;  %vm153_vm1 = vcmask 31744   ;;  %vm80_vm2 = vcmask 523264   ;;  %vm221_vm3 = vcmask 261120   ;;  %s813_s2 = inlined_call_operand.vmem [shape: f32[320,32], index: 2, kind: input, shape index: {}]   ;;  %s814_s3 = inlined_call_operand.vmem [shape: f32[4,32], index: 3, kind: input, shape index: {}]   ;;  %s815_s1 = inlined_call_operand.vmem [shape: f32[40,4], index: 1, kind: input, shape index: {}]   ;;  %s816_s0 = inlined_call_operand.vmem [shape: f32[2,320], index: 0, kind: input, shape index: {}]   ;;  %s817_s4 = inlined_call_operand.vmem [shape: f32[1,32], index: 4, kind: input, shape index: {}]   ;;  %s818_s6 = inlined_call_operand.vmem [shape: f32[1,32], index: 6, kind: input, shape index: {}]   ;;  %s819_s8 = inlined_call_operand.vmem [shape: f32[1,128], index: 8, kind: input, shape index: {}]   ;;  %s820_s7 = inlined_call_operand.vmem [shape: f32[32,128], index: 7, kind: input, shape index: {}]   ;;  %s821_s5 = inlined_call_operand.vmem [shape: f32[1,32], index: 5, kind: input, shape index: {}]   ;;  %s822_s9 = inlined_call_operand.vmem [shape: f32[80,128], index: 9, kind: output, shape index: {}]  }
   0x1   :  { %v48_v0 = vld [vmem:[%s813_s2 + $0x78] sm:$0xff]  ;;  %v47_v1 = vld [vmem:[%s813_s2 + $0x70] sm:$0xff]  ;;  %v46_v3 = vld [vmem:[%s813_s2 + $0x68] sm:$0xff] }
   0x2   :  { %83 = vmatpush.msra.mxu0 %v48_v0  ;;  %v64_v2 = vld [vmem:[%s813_s2 + $0xf8] sm:$0xff]  ;;  %v63_v4 = vld [vmem:[%s813_s2 + $0xf0] sm:$0xff]  ;;  %v148_v5 = vld [vmem:[%s814_s3] sm:$0xf] }
   0x3   :  { %103 = vmatpush.msra.mxu1 %v64_v2  ;;  %451 = vmatpush.msk.msra.mxu3 %vm169_vm0, %v148_v5  ;;  %v143_v6 = vld [vmem:[%s815_s1] sm:$0xff]  ;;  %v62_v7 = vld [vmem:[%s813_s2 + $0xe8] sm:$0xff]  ;;  %v44_v10 = vld [vmem:[%s813_s2 + $0x58] sm:$0xff] }
   0x4   :  { %84 = vmatpush.msra.mxu0 %v47_v1  ;;  %v45_v8 = vld [vmem:[%s813_s2 + $0x60] sm:$0xff]  ;;  %452 = vmatmul.msk.f32.vlgmr.msra.gmra.mxu3 %vm153_vm1, %v143_v6  ;;  %v60_v11 = vld [vmem:[%s813_s2 + $0xd8] sm:$0xff]  ;;  %v43_v12 = vld [vmem:[%s813_s2 + $0x50] sm:$0xff] }
   0x5   :  { %104 = vmatpush.msra.mxu1 %v63_v4  ;;  %v61_v9 = vld [vmem:[%s813_s2 + $0xe0] sm:$0xff]  ;;  %v59_v13 = vld [vmem:[%s813_s2 + $0xd0] sm:$0xff]  ;;  %v144_v14 = vld [vmem:[%s815_s1 + $0x8] sm:$0xff] }
   0x6   :  { %85 = vmatpush.msra.mxu0 %v46_v3  ;;  %v42_v15 = vld [vmem:[%s813_s2 + $0x48] sm:$0xff]  ;;  %v41_v17 = vld [vmem:[%s813_s2 + $0x40] sm:$0xff]  ;;  %v40_v20 = vld [vmem:[%s813_s2 + $0x38] sm:$0xff] }
   0x7   :  { %105 = vmatpush.msra.mxu1 %v62_v7  ;;  %v58_v16 = vld [vmem:[%s813_s2 + $0xc8] sm:$0xff]  ;;  %v57_v18 = vld [vmem:[%s813_s2 + $0xc0] sm:$0xff]  ;;  %v56_v21 = vld [vmem:[%s813_s2 + $0xb8] sm:$0xff] }
   0x8   :  { %86 = vmatpush.msra.mxu0 %v45_v8  ;;  %v32_v19 = vld [vmem:[%s816_s0] sm:$0x3f]  ;;  %v39_v22 = vld [vmem:[%s813_s2 + $0x30] sm:$0xff]  ;;  %v38_v25 = vld [vmem:[%s813_s2 + $0x28] sm:$0xff] }
   0x9   :  { %106 = vmatpush.msra.mxu1 %v61_v9  ;;  %74 = vst [vmem:[#allocation1] ss:$4 sm:$0xff] %v32_v19  ;;  %v55_v23 = vld [vmem:[%s813_s2 + $0xb0] sm:$0xff]  ;;  %v54_v26 = vld [vmem:[%s813_s2 + $0xa8] sm:$0xff]  ;;  %v37_v27 = vld [vmem:[%s813_s2 + $0x20] sm:$0xff] }
   0xa   :  { %87 = vmatpush.msra.mxu0 %v44_v10  ;;  %v145_v24 = vld [vmem:[%s815_s1 + $0x10] sm:$0xff]  ;;  %v53_v28 = vld [vmem:[%s813_s2 + $0xa0] sm:$0xff]  ;;  %v36_v29 = vld [vmem:[%s813_s2 + $0x18] sm:$0xff] }
   0xb   :  { %107 = vmatpush.msra.mxu1 %v60_v11  ;;  %v52_v30 = vld [vmem:[%s813_s2 + $0x98] sm:$0xff]  ;;  %v35_v31 = vld [vmem:[%s813_s2 + $0x10] sm:$0xff]  ;;  %v34_v34 = vld [vmem:[%s813_s2 + $0x8] sm:$0xff] }
   0xc   :  { %88 = vmatpush.msra.mxu0 %v43_v12  ;;  %453 = vmatmul.msk.f32.gmra.mxu3 %vm153_vm1, %v144_v14  ;;  %v51_v32 = vld [vmem:[%s813_s2 + $0x90] sm:$0xff]  ;;  %v146_v33 = vld [vmem:[%s815_s1 + $0x18] sm:$0xff]  ;;  %v50_v35 = vld [vmem:[%s813_s2 + $0x88] sm:$0xff] }
   0xd   :  { %108 = vmatpush.msra.mxu1 %v59_v13  ;;  %v33_v36 = vld [vmem:[%s813_s2] sm:$0xff]  ;;  %v72_v37 = vld [vmem:[%s813_s2 + $0x138] sm:$0xff]  ;;  %v71_v41 = vld [vmem:[%s813_s2 + $0x130] sm:$0xff] }
   0xe   :  { %89 = vmatpush.msra.mxu0 %v42_v15  ;;  %v49_v38 = vld [vmem:[%s813_s2 + $0x80] sm:$0xff]  ;;  %v70_v42 = vld [vmem:[%s813_s2 + $0x128] sm:$0xff]  ;;  %v68_v45 = vld [vmem:[%s813_s2 + $0x118] sm:$0xff]  ;;  %v483_v15 = vmov 80.0  }
   0xf   :  { %109 = vmatpush.msra.mxu1 %v58_v16  ;;  %v147_v43 = vld [vmem:[%s815_s1 + $0x20] sm:$0xff]  ;;  %v67_v46 = vld [vmem:[%s813_s2 + $0x110] sm:$0xff]  ;;  %v66_v47 = vld [vmem:[%s813_s2 + $0x108] sm:$0xff]  ;;  %479 = vrcp.f32 %v483_v15 }
  0x10   :  { %90 = vmatpush.msra.mxu0 %v41_v17  ;;  %v75_v39 = vld.sshfl [vmem:[#allocation1] sm:$0xff pattern:$0x73625140]  ;;  %v76_v40 = vld.sshfl [vmem:[#allocation1 + $0x8] sm:$0xff pattern:$0x73625140] }
  0x11   :  { %110 = vmatpush.msra.mxu1 %v57_v18  ;;  %v69_v44 = vld [vmem:[%s813_s2 + $0x120] sm:$0xff]  ;;  %v77_v49 = vld.sshfl [vmem:[#allocation1 + $0x10] sm:$0xff pattern:$0x73625140] }
  0x12   :  { %91 = vmatpush.msra.mxu0 %v40_v20  ;;  %v65_v48 = vld [vmem:[%s813_s2 + $0x100] sm:$0xff] }
  0x13   :  { %111 = vmatpush.msra.mxu1 %v56_v21  ;;  %v476_v56 = vld [vmem:[%s817_s4] ss:$0 sm:$0xff] }
  0x14   :  { %92 = vmatpush.msra.mxu0 %v39_v22  ;;  %454 = vmatmul.msk.f32.gmra.mxu3 %vm153_vm1, %v145_v24 }
  0x15   :  { %112 = vmatpush.msra.mxu1 %v55_v23  ;;  %v480_v24 = vpop.eup %479 }
  0x16   :  { %93 = vmatpush.msra.mxu0 %v38_v25  ;;  %vm252_vm4 = vweird.f32 %v480_v24 }
  0x17   :  { %113 = vmatpush.msra.mxu1 %v54_v26 }
  0x18   :  { %94 = vmatpush.msra.mxu0 %v37_v27 }
  0x19   :  { %114 = vmatpush.msra.mxu1 %v53_v28 }
  0x1a   :  { %95 = vmatpush.msra.mxu0 %v36_v29 }
  0x1b   :  { %115 = vmatpush.msra.mxu1 %v52_v30 }
  0x1c   :  { %96 = vmatpush.msra.mxu0 %v35_v31  ;;  %455 = vmatmul.msk.f32.gmra.mxu3 %vm153_vm1, %v146_v33  ;;  %v248_v31 = vmul.f32 80.0, %v480_v24 }
  0x1d   :  { %116 = vmatpush.msra.mxu1 %v51_v32 }
  0x1e   :  { %97 = vmatpush.msra.mxu0 %v34_v34 }
  0x1f   :  { %117 = vmatpush.msra.mxu1 %v50_v35 }
  0x20   :  { %98 = vmatpush.msra.mxu0 %v33_v36  ;;  %v249_v36 = vsub.f32 1.0, %v248_v31  ;;  %v351_v31 = vld [vmem:[%s820_s7] sm:$0xff] }
  0x21   :  { %118 = vmatpush.msra.mxu1 %v49_v38  ;;  %99 = vmatmul.f32.vlgmr.msra.gmra.mxu0 %v75_v39 }
  0x22   :  { %131 = vmatpush.msrb.mxu0 %v72_v37  ;;  %119 = vmatmul.f32.vlgmr.msra.gmra.mxu1 %v76_v40  ;;  %v250_v39 = vmul.f32 %v480_v24, %v249_v36 }
  0x24   :  { %132 = vmatpush.msrb.mxu0 %v71_v41  ;;  %456 = vmatmul.msk.f32.gmra.mxu3 %vm153_vm1, %v147_v43 }
  0x26   :  { %133 = vmatpush.msrb.mxu0 %v70_v42  ;;  %v251_v42 = vadd.f32 %v480_v24, %v250_v39 }
  0x28   :  { %134 = vmatpush.msrb.mxu0 %v69_v44 }
  0x2a   :  { %135 = vmatpush.msrb.mxu0 %v68_v45  ;;  %v693_v45 = vsel %vm252_vm4, %v480_v24, %v251_v42 }
  0x2c   :  { %136 = vmatpush.msrb.mxu0 %v67_v46 }
  0x2e   :  { %137 = vmatpush.msrb.mxu0 %v66_v47 }
  0x30   :  { %138 = vmatpush.msrb.mxu0 %v65_v48 }
  0x31   :  { %450 = vmatmul.msk.f32.vlgmr.msrb.gmra.mxu0 %vm80_vm2, %v77_v49 }
  0x87   :  { %v190_v50 = vpop.f32.mrf.mxu3 }
  0x88   :  { %v191_v60 = vadd.f32 %v476_v56, %v190_v50 }
  0x8f   :  { %v193_v51 = vpop.f32.mrf.mxu3 }
  0x90   :  { %v194_v61 = vadd.f32 %v476_v56, %v193_v51 }
  0x97   :  { %v196_v52 = vpop.f32.mrf.mxu3 }
  0x98   :  { %v197_v0 = vadd.f32 %v476_v56, %v196_v52 }
  0x9e   :  { %v100_v53 = vpop.f32.mrf.mxu0 }
  0x9f   :  { %v199_v54 = vpop.f32.mrf.mxu3  ;;  %v120_v55 = vpop.f32.mrf.mxu1 }
  0xa0   :  { %v121_v57 = vadd.f32 %v120_v55, %v100_v53  ;;  %v200_v4 = vadd.f32 %v476_v56, %v199_v54 }
  0xa7   :  { %v202_v63 = vpop.f32.mrf.mxu3 }
  0xa8   :  { %v203_v5 = vadd.f32 %v476_v56, %v202_v63 }
  0xae   :  { %v140_v58 = vpop.f32.mrf.mxu0 }
  0xaf   :  { %v141_v59 = vadd.f32 %v140_v58, %v121_v57 }
  0xb1   :  { %v207_v62 = vperm.slane %v141_v59, 0  ;;  %v206_v1 = vrot.slane %v141_v59, 1 }
  0xb3   :  { %v211_v2 = vadd.f32 %v207_v62, %v191_v60  ;;  %v212_v3 = vadd.f32 %v207_v62, %v194_v61  ;;  %v213_v6 = vadd.f32 %v207_v62, %v197_v0  ;;  %v208_v7 = vperm.slane %v206_v1, 0 }
  0xb4   :  { %v214_v8 = vadd.f32 %v207_v62, %v200_v4  ;;  %v215_v12 = vadd.f32 %v207_v62, %v203_v5 }
  0xb5   :  { %v222_v9 = vsel %vm221_vm3, %v211_v2, 0.0  ;;  %v223_v10 = vsel %vm221_vm3, %v212_v3, 0.0  ;;  %v225_v13 = vsel %vm221_vm3, %v213_v6, 0.0  ;;  %v216_v16 = vadd.f32 %v208_v7, %v191_v60 }
  0xb6   :  { %v224_v11 = vadd.f32 %v223_v10, %v222_v9  ;;  %v227_v17 = vsel %vm221_vm3, %v214_v8, 0.0  ;;  %v217_v19 = vadd.f32 %v208_v7, %v194_v61  ;;  %v229_v20 = vsel %vm221_vm3, %v215_v12, 0.0 }
  0xb7   :  { %v218_v22 = vadd.f32 %v208_v7, %v197_v0  ;;  %v231_v23 = vsel %vm221_vm3, %v216_v16, 0.0  ;;  %v219_v26 = vadd.f32 %v208_v7, %v200_v4  ;;  %v220_v29 = vadd.f32 %v208_v7, %v203_v5 }
  0xb8   :  { %v226_v14 = vadd.f32 %v225_v13, %v224_v11  ;;  %v233_v27 = vsel %vm221_vm3, %v217_v19, 0.0 }
  0xb9   :  { %v235_v30 = vsel %vm221_vm3, %v218_v22, 0.0  ;;  %v237_v33 = vsel %vm221_vm3, %v219_v26, 0.0  ;;  %v239_v35 = vsel %vm221_vm3, %v220_v29, 0.0 }
  0xba   :  { %v228_v18 = vadd.f32 %v227_v17, %v226_v14 }
  0xbc   :  { %v230_v21 = vadd.f32 %v229_v20, %v228_v18 }
  0xbe   :  { %v232_v25 = vadd.f32 %v231_v23, %v230_v21 }
  0xc0   :  { %v234_v28 = vadd.f32 %v233_v27, %v232_v25  ;;  %v353_v27 = vld [vmem:[%s820_s7 + $0x10] sm:$0xff] }
  0xc2   :  { %v236_v32 = vadd.f32 %v235_v30, %v234_v28 }
  0xc4   :  { %v238_v34 = vadd.f32 %v237_v33, %v236_v32 }
  0xc6   :  { %v240_v37 = vadd.f32 %v239_v35, %v238_v34 }
  0xc8   :  { %v241_v38 = vrot.slane %v240_v37, 4 }
  0xca   :  { %v242_v40 = vadd.f32 %v241_v38, %v240_v37 }
  0xcc   :  { %v243_v41 = vrot.slane %v242_v40, 2 }
  0xce   :  { %v244_v43 = vadd.f32 %v243_v41, %v242_v40  ;;  %v301_v40 = vld [vmem:[%s821_s5] sm:$0x1] }
  0xd0   :  { %v245_v44 = vrot.slane %v244_v43, 1 }
  0xd2   :  { %v246_v46 = vadd.f32 %v245_v44, %v244_v43 }
  0xd4   :  { %v254_v47 = vmul.f32 %v693_v45, %v246_v46 }
  0xd6   :  { %v696_v48 = vsub.f32 %v211_v2, %v254_v47  ;;  %v698_v49 = vsub.f32 %v212_v3, %v254_v47  ;;  %v700_v50 = vsub.f32 %v213_v6, %v254_v47  ;;  %v702_v51 = vsub.f32 %v214_v8, %v254_v47 }
  0xd7   :  { %v708_v54 = vsub.f32 %v215_v12, %v254_v47  ;;  %v712_v56 = vsub.f32 %v216_v16, %v254_v47  ;;  %v718_v61 = vsub.f32 %v217_v19, %v254_v47  ;;  %v723_v1 = vsub.f32 %v218_v22, %v254_v47 }
  0xd8   :  { %v265_v52 = vmul.f32 %v696_v48, %v696_v48  ;;  %v266_v53 = vmul.f32 %v698_v49, %v698_v49  ;;  %v267_v55 = vmul.f32 %v700_v50, %v700_v50  ;;  %v268_v57 = vmul.f32 %v702_v51, %v702_v51 }
  0xd9   :  { %v269_v62 = vmul.f32 %v708_v54, %v708_v54  ;;  %v270_v2 = vmul.f32 %v712_v56, %v712_v56  ;;  %v263_v5 = vsub.f32 %v219_v26, %v254_v47  ;;  %v271_v6 = vmul.f32 %v718_v61, %v718_v61  ;;  %v354_v26 = vld [vmem:[%s820_s7 + $0x18] sm:$0xff] }
  0xda   :  { %v275_v58 = vsel %vm221_vm3, %v265_v52, 0.0  ;;  %v276_v59 = vsel %vm221_vm3, %v266_v53, 0.0  ;;  %v278_v63 = vsel %vm221_vm3, %v267_v55, 0.0  ;;  %v280_v3 = vsel %vm221_vm3, %v268_v57, 0.0  ;;  %468 = vmatpush.msrb.mxu3 %v354_v26  ;;  %401 = vmatpush.msrb.mxu1 %v354_v26 }
  0xdb   :  { %v277_v60 = vadd.f32 %v276_v59, %v275_v58  ;;  %v282_v7 = vsel %vm221_vm3, %v269_v62, 0.0  ;;  %v731_v9 = vsub.f32 %v220_v29, %v254_v47  ;;  %v272_v10 = vmul.f32 %v723_v1, %v723_v1  ;;  %467 = vmatpush.msra.mxu2 %v354_v26  ;;  %v352_v29 = vld [vmem:[%s820_s7 + $0x8] sm:$0xff] }
  0xdc   :  { %v284_v11 = vsel %vm221_vm3, %v270_v2, 0.0  ;;  %v273_v13 = vmul.f32 %v263_v5, %v263_v5  ;;  %v286_v14 = vsel %vm221_vm3, %v271_v6, 0.0  ;;  %402 = vmatpush.msrb.mxu1 %v353_v27  ;;  %470 = vmatpush.msrb.mxu3 %v353_v27 }
  0xdd   :  { %v279_v0 = vadd.f32 %v278_v63, %v277_v60  ;;  %v274_v16 = vmul.f32 %v731_v9, %v731_v9  ;;  %v288_v17 = vsel %vm221_vm3, %v272_v10, 0.0  ;;  %469 = vmatpush.msra.mxu2 %v353_v27 }
  0xde   :  { %v290_v19 = vsel %vm221_vm3, %v273_v13, 0.0  ;;  %403 = vmatpush.msrb.mxu1 %v352_v29  ;;  %472 = vmatpush.msrb.mxu3 %v352_v29 }
  0xdf   :  { %v281_v4 = vadd.f32 %v280_v3, %v279_v0  ;;  %v292_v21 = vsel %vm221_vm3, %v274_v16, 0.0  ;;  %471 = vmatpush.msra.mxu2 %v352_v29 }
  0xe0   :  { %404 = vmatpush.msrb.mxu1 %v351_v31  ;;  %474 = vmatpush.msrb.mxu3 %v351_v31 }
  0xe1   :  { %v283_v8 = vadd.f32 %v282_v7, %v281_v4  ;;  %473 = vmatpush.msra.mxu2 %v351_v31 }
  0xe3   :  { %v285_v12 = vadd.f32 %v284_v11, %v283_v8 }
  0xe5   :  { %v287_v15 = vadd.f32 %v286_v14, %v285_v12  ;;  %v478_v12 = vld [vmem:[%s819_s8] ss:$0 sm:$0xff] }
  0xe7   :  { %v289_v18 = vadd.f32 %v288_v17, %v287_v15 }
  0xe9   :  { %v291_v20 = vadd.f32 %v290_v19, %v289_v18 }
  0xeb   :  { %v293_v22 = vadd.f32 %v292_v21, %v291_v20 }
  0xed   :  { %v294_v23 = vrot.slane %v293_v22, 4 }
  0xef   :  { %v295_v24 = vadd.f32 %v294_v23, %v293_v22 }
  0xf1   :  { %v296_v25 = vrot.slane %v295_v24, 2 }
  0xf3   :  { %v297_v28 = vadd.f32 %v296_v25, %v295_v24 }
  0xf5   :  { %v298_v30 = vrot.slane %v297_v28, 1 }
  0xf7   :  { %v299_v32 = vadd.f32 %v298_v30, %v297_v28 }
  0xf9   :  { %v300_v33 = vmul.f32 %v299_v32, %v693_v45  ;;  %v477_v45 = vld [vmem:[%s818_s6] ss:$0 sm:$0xff] }
  0xfb   :  { %v302_v34 = vadd.f32 1e-05, %v300_v33 }
  0xfd   :  { %481 = vrsqrt.f32 %v302_v34  ;;  %vm309_vm6 = vweird.f32 %v302_v34 }
 0x103   :  { %v482_v35 = vpop.eup %481 }
 0x104   :  { %v304_v36 = vmul.f32 %v482_v35, %v302_v34  ;;  %vm310_vm5 = vweird.f32 %v482_v35 }
 0x105   :  { %vm311_vm7 = vmor %vm309_vm6, %vm310_vm5 }
 0x106   :  { %v305_v37 = vmul.f32 %v482_v35, %v304_v36 }
 0x108   :  { %v306_v38 = vmul.f32 0.5, %v305_v37 }
 0x10a   :  { %v307_v39 = vsub.f32 1.5, %v306_v38 }
 0x10c   :  { %v308_v41 = vmul.f32 %v482_v35, %v307_v39 }
 0x10e   :  { %v312_v42 = vsel %vm311_vm7, %v482_v35, %v308_v41 }
 0x10f   :  { %v313_v43 = vmul.f32 %v312_v42, %v301_v40 }
 0x111   :  { %v315_v44 = vperm.slane %v313_v43, 0 }
 0x113   :  { %v317_v46 = vmul.f32 %v315_v44, %v696_v48  ;;  %v319_v47 = vmul.f32 %v315_v44, %v700_v50  ;;  %v325_v52 = vmul.f32 %v315_v44, %v263_v5  ;;  %v318_v53 = vmul.f32 %v315_v44, %v698_v49 }
 0x114   :  { %v320_v55 = vmul.f32 %v315_v44, %v702_v51  ;;  %v321_v57 = vmul.f32 %v315_v44, %v708_v54  ;;  %v322_v58 = vmul.f32 %v315_v44, %v712_v56  ;;  %v326_v3 = vmul.f32 %v315_v44, %v731_v9 }
 0x115   :  { %v331_v59 = vadd.f32 %v477_v45, %v317_v46  ;;  %v333_v60 = vadd.f32 %v477_v45, %v319_v47  ;;  %v339_v62 = vadd.f32 %v477_v45, %v325_v52  ;;  %v323_v48 = vmul.f32 %v315_v44, %v718_v61 }
 0x116   :  { %v324_v49 = vmul.f32 %v315_v44, %v723_v1  ;;  %v332_v50 = vadd.f32 %v477_v45, %v318_v53  ;;  %v334_v51 = vadd.f32 %v477_v45, %v320_v55  ;;  %v340_v54 = vadd.f32 %v477_v45, %v326_v3 }
 0x117   :  { %v341_v63 = vmax.f32 %v331_v59, 0.0  ;;  %v343_v0 = vmax.f32 %v333_v60, 0.0  ;;  %v349_v2 = vmax.f32 %v339_v62, 0.0  ;;  %v335_v6 = vadd.f32 %v477_v45, %v321_v57 }
 0x118   :  { %v342_v56 = vmax.f32 %v332_v50, 0.0  ;;  %v344_v4 = vmax.f32 %v334_v51, 0.0  ;;  %v350_v5 = vmax.f32 %v340_v54, 0.0  ;;  %v336_v61 = vadd.f32 %v477_v45, %v322_v58 }
 0x119   :  { %457 = vmatmul.msk.f32.vlgmr.msrb.gmra.mxu1 %vm221_vm3, %v341_v63  ;;  %459 = vmatmul.msk.f32.vlgmr.msra.gmra.mxu2 %vm221_vm3, %v343_v0  ;;  %v345_v7 = vmax.f32 %v335_v6, 0.0  ;;  %v337_v8 = vadd.f32 %v477_v45, %v323_v48  ;;  %v338_v10 = vadd.f32 %v477_v45, %v324_v49 }
 0x11a   :  { %465 = vmatmul.msk.f32.vlgmr.msrb.gmra.mxu3 %vm221_vm3, %v349_v2  ;;  %v346_v1 = vmax.f32 %v336_v61, 0.0 }
 0x11b   :  { %v347_v9 = vmax.f32 %v337_v8, 0.0  ;;  %v348_v11 = vmax.f32 %v338_v10, 0.0 }
 0x121   :  { %458 = vmatmul.msk.f32.gmra.mxu1 %vm221_vm3, %v342_v56  ;;  %460 = vmatmul.msk.f32.gmra.mxu2 %vm221_vm3, %v344_v4 }
 0x122   :  { %466 = vmatmul.msk.f32.gmra.mxu3 %vm221_vm3, %v350_v5 }
 0x129   :  { %461 = vmatmul.msk.f32.gmra.mxu2 %vm221_vm3, %v345_v7 }
 0x131   :  { %462 = vmatmul.msk.f32.gmra.mxu2 %vm221_vm3, %v346_v1 }
 0x139   :  { %463 = vmatmul.msk.f32.gmra.mxu2 %vm221_vm3, %v347_v9 }
 0x141   :  { %464 = vmatmul.msk.f32.gmra.mxu2 %vm221_vm3, %v348_v11 }
 0x196   :  { %v406_v13 = vpop.f32.mrf.mxu1 }
 0x197   :  { %v407_v14 = vadd.f32 %v478_v12, %v406_v13 }
 0x199   :  { %436 = vst [vmem:[%s822_s9] sm:$0xff] %v407_v14 }
 0x19c   :  { %v412_v15 = vpop.f32.mrf.mxu2 }
 0x19d   :  { %v413_v16 = vadd.f32 %v478_v12, %v412_v15  ;;  %v430_v17 = vpop.f32.mrf.mxu3 }
 0x19e   :  { %v431_v18 = vadd.f32 %v478_v12, %v430_v17  ;;  %v409_v19 = vpop.f32.mrf.mxu1 }
 0x19f   :  { %438 = vst [vmem:[%s822_s9 + $0x10] sm:$0xff] %v413_v16  ;;  %v410_v20 = vadd.f32 %v478_v12, %v409_v19 }
 0x1a0   :  { %444 = vst [vmem:[%s822_s9 + $0x40] sm:$0xff] %v431_v18 }
 0x1a1   :  { %437 = vst [vmem:[%s822_s9 + $0x8] sm:$0xff] %v410_v20 }
 0x1a4   :  { %v415_v21 = vpop.f32.mrf.mxu2 }
 0x1a5   :  { %v416_v22 = vadd.f32 %v478_v12, %v415_v21  ;;  %v433_v23 = vpop.f32.mrf.mxu3 }
 0x1a6   :  { %v434_v24 = vadd.f32 %v478_v12, %v433_v23 }
 0x1a7   :  { %439 = vst [vmem:[%s822_s9 + $0x18] sm:$0xff] %v416_v22 }
 0x1a8   :  { %445 = vst [vmem:[%s822_s9 + $0x48] sm:$0xff] %v434_v24 }
 0x1ac   :  { %v418_v25 = vpop.f32.mrf.mxu2 }
 0x1ad   :  { %v419_v26 = vadd.f32 %v478_v12, %v418_v25 }
 0x1af   :  { %440 = vst [vmem:[%s822_s9 + $0x20] sm:$0xff] %v419_v26 }
 0x1b4   :  { %v421_v27 = vpop.f32.mrf.mxu2 }
 0x1b5   :  { %v422_v28 = vadd.f32 %v478_v12, %v421_v27 }
 0x1b7   :  { %441 = vst [vmem:[%s822_s9 + $0x28] sm:$0xff] %v422_v28 }
 0x1bc   :  { %v424_v29 = vpop.f32.mrf.mxu2 }
 0x1bd   :  { %v425_v30 = vadd.f32 %v478_v12, %v424_v29 }
 0x1bf   :  { %442 = vst [vmem:[%s822_s9 + $0x30] sm:$0xff] %v425_v30 }
 0x1c4   :  { %v427_v31 = vpop.f32.mrf.mxu2 }
 0x1c5   :  { %v428_v32 = vadd.f32 %v478_v12, %v427_v31 }
 0x1c7   :  { %443 = vst [vmem:[%s822_s9 + $0x38] sm:$0xff] %v428_v32 }

</bundles_post_ra>
